<compile_context>
chip_gen: v6e
topology: v6e:2x2x1
jax: 0.10.0
libtpu: 0.0.40
codegen_flags: <defaults>
</compile_context>

<pallas_src>
import math

import jax
import jax.numpy as jnp
from jax.experimental import pallas as pl
from jax.experimental.pallas import tpu as pltpu

INPUT_DIM = 7
TOTAL_LEN = 3
NUM_LAYERS = 2
HP = 8  # hidden size padded 7 -> 8 so gate boundaries land on 8-sublane offsets


def lstm_stock_kernel(seq_ref, wih_ref, whh_ref, b_ref, out_ref):
    # seq_ref : (T, HP, B)      zero-padded input sequence, feature-major
    # wih_ref : (2, 4*HP, HP)   per-layer input weights, gate rows (i,f,g,o),
    #                           g rows pre-scaled x2 (tanh via sigmoid)
    # whh_ref : (2, 4*HP, HP)   per-layer hidden weights, same packing
    # b_ref   : (2, 4*HP, 1)    b_ih + b_hh per layer (g rows pre-scaled x2)
    # out_ref : (n_dec, HP, B)  concatenated decoder inputs (padded, transposed)
    T, Hp, B = seq_ref.shape
    n_dec = out_ref.shape[0]

    # Load weights once; hoist bias broadcasts out of the time loops.
    wih0, wih1 = wih_ref[0], wih_ref[1]
    whh0, whh1 = whh_ref[0], whh_ref[1]
    b0 = jnp.broadcast_to(b_ref[0], (4 * Hp, B))
    b1 = jnp.broadcast_to(b_ref[1], (4 * Hp, B))

    def cell(x, h, c, wih, whh, b):
        # Two fused 4-gate dots (no cross-lane concat), one VPU accumulate.
        z = (jnp.dot(wih, x, preferred_element_type=jnp.float32)
             + jnp.dot(whh, h, preferred_element_type=jnp.float32)
             + b)                                   # (4*HP, B)
        # One sigmoid over all four gates; g via tanh(x) = 2*sigmoid(2x) - 1
        # (the 2x is folded into the packed weights/bias host-side).
        a = jax.nn.sigmoid(z)
        i = a[0 * Hp:1 * Hp]                        # sublane-aligned slices
        f = a[1 * Hp:2 * Hp]
        g = 2.0 * a[2 * Hp:3 * Hp] - 1.0
        o = a[3 * Hp:4 * Hp]
        c_new = f * c + i * g
        h_new = o * jnp.tanh(c_new)
        return h_new, c_new

    zeros = jnp.zeros((Hp, B), jnp.float32)
    h0, c0, h1, c1 = zeros, zeros, zeros, zeros

    # ---- encoder: 2-layer LSTM over the input sequence (T small & static) ----
    for t in range(T):
        h0, c0 = cell(seq_ref[t], h0, c0, wih0, whh0, b0)
        h1, c1 = cell(h0, h1, c1, wih1, whh1, b1)

    # encode_outputs[-1].view(1, -1, INPUT_DIM) == h1 (pure reshape: H == INPUT_DIM)
    dec_x = h1

    # ---- decoder: the PyTorch loop appends dec_x BEFORE each LSTM step, so the
    # last step's result is never used; compute only n_dec - 1 steps. ----
    outs = [dec_x]
    for _ in range(n_dec - 1):
        h0, c0 = cell(dec_x, h0, c0, wih0, whh0, b0)
        h1, c1 = cell(h0, h1, c1, wih1, whh1, b1)
        dec_x = h1
        outs.append(dec_x)

    # Single coalesced, batch-lane-dense store.
    out_ref[...] = jnp.stack(outs, axis=0)


def init_params(key, input_dim, cell_dim, num_layers=NUM_LAYERS):
    """nn.LSTM-shaped deterministic params; returns (packed-for-kernel, raw)."""
    assert input_dim == cell_dim == INPUT_DIM
    k = 1.0 / math.sqrt(cell_dim)
    keys = jax.random.split(key, num_layers * 4)
    H = cell_dim
    gate_scale = jnp.array([1.0, 1.0, 2.0, 1.0], jnp.float32)  # x2 on the 'g' gate

    raw = []
    wih_l, whh_l, b_l = [], [], []
    for l in range(num_layers):
        in_dim = input_dim if l == 0 else cell_dim
        w_ih = jax.random.uniform(keys[4 * l + 0], (4 * H, in_dim), jnp.float32, -k, k)
        w_hh = jax.random.uniform(keys[4 * l + 1], (4 * H, H), jnp.float32, -k, k)
        b_ih = jax.random.uniform(keys[4 * l + 2], (4 * H,), jnp.float32, -k, k)
        b_hh = jax.random.uniform(keys[4 * l + 3], (4 * H,), jnp.float32, -k, k)
        raw.append({"w_ih": w_ih, "w_hh": w_hh, "b_ih": b_ih, "b_hh": b_hh})

        # PyTorch gate order (i, f, g, o) along rows; keep W @ x form
        # (no transpose), pre-scale the g gate by 2, zero-pad 7 -> HP on both
        # the per-gate output rows and the input columns (pads stay exactly 0
        # through the recurrence: sigmoid(0)=0.5 gates g_pad=0, c_pad=0).
        wih_g = w_ih.reshape(4, H, in_dim) * gate_scale[:, None, None]
        whh_g = w_hh.reshape(4, H, H) * gate_scale[:, None, None]
        b_g = (b_ih + b_hh).reshape(4, H) * gate_scale[:, None]

        wih_p = jnp.zeros((4, HP, HP), jnp.float32).at[:, :H, :in_dim].set(wih_g)
        whh_p = jnp.zeros((4, HP, HP), jnp.float32).at[:, :H, :H].set(whh_g)
        b_p = jnp.zeros((4, HP), jnp.float32).at[:, :H].set(b_g)

        wih_l.append(wih_p.reshape(4 * HP, HP))
        whh_l.append(whh_p.reshape(4 * HP, HP))
        b_l.append(b_p.reshape(4 * HP, 1))

    packed = {
        "wih": jnp.stack(wih_l),  # (2, 4*HP, HP)
        "whh": jnp.stack(whh_l),  # (2, 4*HP, HP)
        "b": jnp.stack(b_l),      # (2, 4*HP, 1)
    }
    return packed, raw


@jax.jit
def lstm_stock_forward(seq, packed):
    T, B, D = seq.shape
    assert D == INPUT_DIM
    n_dec = TOTAL_LEN - T
    assert n_dec >= 1, "module only produces output when T < TOTAL_LEN"

    # Pad features 7 -> HP and transpose to feature-major (T, HP, B);
    # fused with the kernel dispatch under this jit.
    seq_p = jnp.zeros((T, HP, B), jnp.float32).at[:, :D, :].set(
        jnp.transpose(seq, (0, 2, 1)))

    vmem = pl.BlockSpec(memory_space=pltpu.MemorySpace.VMEM)
    out_p = pl.pallas_call(
        lstm_stock_kernel,
        out_shape=jax.ShapeDtypeStruct((n_dec, HP, B), jnp.float32),
        in_specs=[vmem, vmem, vmem, vmem],
        out_specs=vmem,
    )(seq_p, packed["wih"], packed["whh"], packed["b"])

    # Back to the module's (n_dec, B, INPUT_DIM) layout (fused under jit).
    return jnp.transpose(out_p[:, :INPUT_DIM, :], (0, 2, 1))


def reference_forward(seq, raw):
    """Pure-JAX reference mirroring the PyTorch forward pass (unfused math)."""
    T, B, _ = seq.shape
    H = raw[0]["w_hh"].shape[1]

    def cell(x, h, c, p):
        gates = x @ p["w_ih"].T + h @ p["w_hh"].T + p["b_ih"] + p["b_hh"]
        i, f, g, o = jnp.split(gates, 4, axis=-1)
        i = jax.nn.sigmoid(i)
        f = jax.nn.sigmoid(f)
        g = jnp.tanh(g)
        o = jax.nn.sigmoid(o)
        c = f * c + i * g
        return o * jnp.tanh(c), c

    zeros = jnp.zeros((B, H), jnp.float32)
    h0, c0, h1, c1 = zeros, zeros, zeros, zeros
    for t in range(T):
        h0, c0 = cell(seq[t], h0, c0, raw[0])
        h1, c1 = cell(h0, h1, c1, raw[1])
    dec_x = h1
    outs = []
    for _ in range(TOTAL_LEN - T):
        outs.append(dec_x)
        h0, c0 = cell(dec_x, h0, c0, raw[0])
        h1, c1 = cell(h0, h1, c1, raw[1])
        dec_x = h1
    return jnp.stack(outs)


if __name__ == "__main__":
    key = jax.random.PRNGKey(0)
    k_param, k_seq = jax.random.split(key)

    T, B = 1, 8                       # T < TOTAL_LEN so the decoder runs (n_dec = 2)
    seq = jax.random.normal(k_seq, (T, B, INPUT_DIM), jnp.float32)
    packed, raw = init_params(k_param, INPUT_DIM, INPUT_DIM)

    out = lstm_stock_forward(seq, packed)
    out = jax.block_until_ready(out)

    ref = reference_forward(seq, raw)
    assert out.shape == (TOTAL_LEN - T, B, INPUT_DIM)
    assert jnp.allclose(out, ref, atol=1e-5, rtol=1e-5), \
        float(jnp.max(jnp.abs(out - ref)))

    print("KERNEL_OK")
</pallas_src>

<mosaic_0001>
module attributes {stable_mosaic.version = 11 : i64} {
  func.func @lstm_stock_kernel(%arg0: memref<1x8x8xf32, #tpu.memory_space<vmem>>, %arg1: memref<2x32x8xf32, #tpu.memory_space<vmem>>, %arg2: memref<2x32x8xf32, #tpu.memory_space<vmem>>, %arg3: memref<2x32x1xf32, #tpu.memory_space<vmem>>, %arg4: memref<2x8x8xf32, #tpu.memory_space<vmem>>) attributes {dimension_semantics = [], scalar_prefetch = 0 : i64, scratch_operands = 0 : i64, tpu.core_type = #tpu.core_type<tc>} {
    %c0 = arith.constant 0 : index
    %c0_0 = arith.constant 0 : index
    %c0_1 = arith.constant 0 : index
    %0 = vector.load %arg1[%c0, %c0_0, %c0_1] : memref<2x32x8xf32, #tpu.memory_space<vmem>>, vector<1x32x8xf32>
    %1 = vector.shape_cast %0 : vector<1x32x8xf32> to vector<32x8xf32>
    %c1 = arith.constant 1 : index
    %c0_2 = arith.constant 0 : index
    %c0_3 = arith.constant 0 : index
    %2 = vector.load %arg1[%c1, %c0_2, %c0_3] : memref<2x32x8xf32, #tpu.memory_space<vmem>>, vector<1x32x8xf32>
    %3 = vector.shape_cast %2 : vector<1x32x8xf32> to vector<32x8xf32>
    %c0_4 = arith.constant 0 : index
    %c0_5 = arith.constant 0 : index
    %c0_6 = arith.constant 0 : index
    %4 = vector.load %arg2[%c0_4, %c0_5, %c0_6] : memref<2x32x8xf32, #tpu.memory_space<vmem>>, vector<1x32x8xf32>
    %5 = vector.shape_cast %4 : vector<1x32x8xf32> to vector<32x8xf32>
    %c1_7 = arith.constant 1 : index
    %c0_8 = arith.constant 0 : index
    %c0_9 = arith.constant 0 : index
    %6 = vector.load %arg2[%c1_7, %c0_8, %c0_9] : memref<2x32x8xf32, #tpu.memory_space<vmem>>, vector<1x32x8xf32>
    %7 = vector.shape_cast %6 : vector<1x32x8xf32> to vector<32x8xf32>
    %c0_10 = arith.constant 0 : index
    %c0_11 = arith.constant 0 : index
    %c0_12 = arith.constant 0 : index
    %8 = vector.load %arg3[%c0_10, %c0_11, %c0_12] : memref<2x32x1xf32, #tpu.memory_space<vmem>>, vector<1x32x1xf32>
    %9 = vector.shape_cast %8 : vector<1x32x1xf32> to vector<32x1xf32>
    %10 = vector.shape_cast %9 : vector<32x1xf32> to vector<32x1xf32>
    %11 = vector.broadcast %10 : vector<32x1xf32> to vector<32x8xf32>
    %c1_13 = arith.constant 1 : index
    %c0_14 = arith.constant 0 : index
    %c0_15 = arith.constant 0 : index
    %12 = vector.load %arg3[%c1_13, %c0_14, %c0_15] : memref<2x32x1xf32, #tpu.memory_space<vmem>>, vector<1x32x1xf32>
    %13 = vector.shape_cast %12 : vector<1x32x1xf32> to vector<32x1xf32>
    %14 = vector.shape_cast %13 : vector<32x1xf32> to vector<32x1xf32>
    %15 = vector.broadcast %14 : vector<32x1xf32> to vector<32x8xf32>
    %cst = arith.constant 0.000000e+00 : f32
    %16 = vector.broadcast %cst : f32 to vector<8x8xf32>
    %c0_16 = arith.constant 0 : index
    %c0_17 = arith.constant 0 : index
    %c0_18 = arith.constant 0 : index
    %17 = vector.load %arg0[%c0_16, %c0_17, %c0_18] : memref<1x8x8xf32, #tpu.memory_space<vmem>>, vector<1x8x8xf32>
    %18 = vector.shape_cast %17 : vector<1x8x8xf32> to vector<8x8xf32>
    %cst_19 = arith.constant dense<0.000000e+00> : vector<32x8xf32>
    %19 = tpu.matmul %1, %18, %cst_19 {dimension_numbers = #tpu.dot_dimension_numbers<[1], [0], [0], [1], [0, 0, 1, 1], [], []>} : vector<32x8xf32>, vector<8x8xf32>, vector<32x8xf32> -> vector<32x8xf32>
    %cst_20 = arith.constant dense<0.000000e+00> : vector<32x8xf32>
    %20 = tpu.matmul %5, %16, %cst_20 {dimension_numbers = #tpu.dot_dimension_numbers<[1], [0], [0], [1], [0, 0, 1, 1], [], []>} : vector<32x8xf32>, vector<8x8xf32>, vector<32x8xf32> -> vector<32x8xf32>
    %21 = arith.addf %19, %20 : vector<32x8xf32>
    %22 = arith.addf %21, %11 : vector<32x8xf32>
    %23 = arith.negf %22 : vector<32x8xf32>
    %24 = math.exp %23 : vector<32x8xf32>
    %cst_21 = arith.constant 1.000000e+00 : f32
    %25 = vector.broadcast %cst_21 : f32 to vector<32x8xf32>
    %26 = arith.addf %25, %24 : vector<32x8xf32>
    %27 = arith.divf %25, %26 : vector<32x8xf32>
    %28 = vector.extract_strided_slice %27 {offsets = [0, 0], sizes = [8, 8], strides = [1, 1]} : vector<32x8xf32> to vector<8x8xf32>
    %29 = vector.extract_strided_slice %27 {offsets = [8, 0], sizes = [8, 8], strides = [1, 1]} : vector<32x8xf32> to vector<8x8xf32>
    %30 = vector.extract_strided_slice %27 {offsets = [16, 0], sizes = [8, 8], strides = [1, 1]} : vector<32x8xf32> to vector<8x8xf32>
    %cst_22 = arith.constant 2.000000e+00 : f32
    %31 = vector.broadcast %cst_22 : f32 to vector<8x8xf32>
    %32 = arith.mulf %31, %30 : vector<8x8xf32>
    %cst_23 = arith.constant 1.000000e+00 : f32
    %33 = vector.broadcast %cst_23 : f32 to vector<8x8xf32>
    %34 = arith.subf %32, %33 : vector<8x8xf32>
    %35 = vector.extract_strided_slice %27 {offsets = [24, 0], sizes = [8, 8], strides = [1, 1]} : vector<32x8xf32> to vector<8x8xf32>
    %36 = arith.mulf %29, %16 : vector<8x8xf32>
    %37 = arith.mulf %28, %34 : vector<8x8xf32>
    %38 = arith.addf %36, %37 : vector<8x8xf32>
    %39 = math.tanh %38 : vector<8x8xf32>
    %40 = arith.mulf %35, %39 : vector<8x8xf32>
    %cst_24 = arith.constant dense<0.000000e+00> : vector<32x8xf32>
    %41 = tpu.matmul %3, %40, %cst_24 {dimension_numbers = #tpu.dot_dimension_numbers<[1], [0], [0], [1], [0, 0, 1, 1], [], []>} : vector<32x8xf32>, vector<8x8xf32>, vector<32x8xf32> -> vector<32x8xf32>
    %cst_25 = arith.constant dense<0.000000e+00> : vector<32x8xf32>
    %42 = tpu.matmul %7, %16, %cst_25 {dimension_numbers = #tpu.dot_dimension_numbers<[1], [0], [0], [1], [0, 0, 1, 1], [], []>} : vector<32x8xf32>, vector<8x8xf32>, vector<32x8xf32> -> vector<32x8xf32>
    %43 = arith.addf %41, %42 : vector<32x8xf32>
    %44 = arith.addf %43, %15 : vector<32x8xf32>
    %45 = arith.negf %44 : vector<32x8xf32>
    %46 = math.exp %45 : vector<32x8xf32>
    %cst_26 = arith.constant 1.000000e+00 : f32
    %47 = vector.broadcast %cst_26 : f32 to vector<32x8xf32>
    %48 = arith.addf %47, %46 : vector<32x8xf32>
    %49 = arith.divf %47, %48 : vector<32x8xf32>
    %50 = vector.extract_strided_slice %49 {offsets = [0, 0], sizes = [8, 8], strides = [1, 1]} : vector<32x8xf32> to vector<8x8xf32>
    %51 = vector.extract_strided_slice %49 {offsets = [8, 0], sizes = [8, 8], strides = [1, 1]} : vector<32x8xf32> to vector<8x8xf32>
    %52 = vector.extract_strided_slice %49 {offsets = [16, 0], sizes = [8, 8], strides = [1, 1]} : vector<32x8xf32> to vector<8x8xf32>
    %cst_27 = arith.constant 2.000000e+00 : f32
    %53 = vector.broadcast %cst_27 : f32 to vector<8x8xf32>
    %54 = arith.mulf %53, %52 : vector<8x8xf32>
    %cst_28 = arith.constant 1.000000e+00 : f32
    %55 = vector.broadcast %cst_28 : f32 to vector<8x8xf32>
    %56 = arith.subf %54, %55 : vector<8x8xf32>
    %57 = vector.extract_strided_slice %49 {offsets = [24, 0], sizes = [8, 8], strides = [1, 1]} : vector<32x8xf32> to vector<8x8xf32>
    %58 = arith.mulf %51, %16 : vector<8x8xf32>
    %59 = arith.mulf %50, %56 : vector<8x8xf32>
    %60 = arith.addf %58, %59 : vector<8x8xf32>
    %61 = math.tanh %60 : vector<8x8xf32>
    %62 = arith.mulf %57, %61 : vector<8x8xf32>
    %cst_29 = arith.constant dense<0.000000e+00> : vector<32x8xf32>
    %63 = tpu.matmul %1, %62, %cst_29 {dimension_numbers = #tpu.dot_dimension_numbers<[1], [0], [0], [1], [0, 0, 1, 1], [], []>} : vector<32x8xf32>, vector<8x8xf32>, vector<32x8xf32> -> vector<32x8xf32>
    %cst_30 = arith.constant dense<0.000000e+00> : vector<32x8xf32>
    %64 = tpu.matmul %5, %40, %cst_30 {dimension_numbers = #tpu.dot_dimension_numbers<[1], [0], [0], [1], [0, 0, 1, 1], [], []>} : vector<32x8xf32>, vector<8x8xf32>, vector<32x8xf32> -> vector<32x8xf32>
    %65 = arith.addf %63, %64 : vector<32x8xf32>
    %66 = arith.addf %65, %11 : vector<32x8xf32>
    %67 = arith.negf %66 : vector<32x8xf32>
    %68 = math.exp %67 : vector<32x8xf32>
    %cst_31 = arith.constant 1.000000e+00 : f32
    %69 = vector.broadcast %cst_31 : f32 to vector<32x8xf32>
    %70 = arith.addf %69, %68 : vector<32x8xf32>
    %71 = arith.divf %69, %70 : vector<32x8xf32>
    %72 = vector.extract_strided_slice %71 {offsets = [0, 0], sizes = [8, 8], strides = [1, 1]} : vector<32x8xf32> to vector<8x8xf32>
    %73 = vector.extract_strided_slice %71 {offsets = [8, 0], sizes = [8, 8], strides = [1, 1]} : vector<32x8xf32> to vector<8x8xf32>
    %74 = vector.extract_strided_slice %71 {offsets = [16, 0], sizes = [8, 8], strides = [1, 1]} : vector<32x8xf32> to vector<8x8xf32>
    %cst_32 = arith.constant 2.000000e+00 : f32
    %75 = vector.broadcast %cst_32 : f32 to vector<8x8xf32>
    %76 = arith.mulf %75, %74 : vector<8x8xf32>
    %cst_33 = arith.constant 1.000000e+00 : f32
    %77 = vector.broadcast %cst_33 : f32 to vector<8x8xf32>
    %78 = arith.subf %76, %77 : vector<8x8xf32>
    %79 = vector.extract_strided_slice %71 {offsets = [24, 0], sizes = [8, 8], strides = [1, 1]} : vector<32x8xf32> to vector<8x8xf32>
    %80 = arith.mulf %73, %38 : vector<8x8xf32>
    %81 = arith.mulf %72, %78 : vector<8x8xf32>
    %82 = arith.addf %80, %81 : vector<8x8xf32>
    %83 = math.tanh %82 : vector<8x8xf32>
    %84 = arith.mulf %79, %83 : vector<8x8xf32>
    %cst_34 = arith.constant dense<0.000000e+00> : vector<32x8xf32>
    %85 = tpu.matmul %3, %84, %cst_34 {dimension_numbers = #tpu.dot_dimension_numbers<[1], [0], [0], [1], [0, 0, 1, 1], [], []>} : vector<32x8xf32>, vector<8x8xf32>, vector<32x8xf32> -> vector<32x8xf32>
    %cst_35 = arith.constant dense<0.000000e+00> : vector<32x8xf32>
    %86 = tpu.matmul %7, %62, %cst_35 {dimension_numbers = #tpu.dot_dimension_numbers<[1], [0], [0], [1], [0, 0, 1, 1], [], []>} : vector<32x8xf32>, vector<8x8xf32>, vector<32x8xf32> -> vector<32x8xf32>
    %87 = arith.addf %85, %86 : vector<32x8xf32>
    %88 = arith.addf %87, %15 : vector<32x8xf32>
    %89 = arith.negf %88 : vector<32x8xf32>
    %90 = math.exp %89 : vector<32x8xf32>
    %cst_36 = arith.constant 1.000000e+00 : f32
    %91 = vector.broadcast %cst_36 : f32 to vector<32x8xf32>
    %92 = arith.addf %91, %90 : vector<32x8xf32>
    %93 = arith.divf %91, %92 : vector<32x8xf32>
    %94 = vector.extract_strided_slice %93 {offsets = [0, 0], sizes = [8, 8], strides = [1, 1]} : vector<32x8xf32> to vector<8x8xf32>
    %95 = vector.extract_strided_slice %93 {offsets = [8, 0], sizes = [8, 8], strides = [1, 1]} : vector<32x8xf32> to vector<8x8xf32>
    %96 = vector.extract_strided_slice %93 {offsets = [16, 0], sizes = [8, 8], strides = [1, 1]} : vector<32x8xf32> to vector<8x8xf32>
    %cst_37 = arith.constant 2.000000e+00 : f32
    %97 = vector.broadcast %cst_37 : f32 to vector<8x8xf32>
    %98 = arith.mulf %97, %96 : vector<8x8xf32>
    %cst_38 = arith.constant 1.000000e+00 : f32
    %99 = vector.broadcast %cst_38 : f32 to vector<8x8xf32>
    %100 = arith.subf %98, %99 : vector<8x8xf32>
    %101 = vector.extract_strided_slice %93 {offsets = [24, 0], sizes = [8, 8], strides = [1, 1]} : vector<32x8xf32> to vector<8x8xf32>
    %102 = arith.mulf %95, %60 : vector<8x8xf32>
    %103 = arith.mulf %94, %100 : vector<8x8xf32>
    %104 = arith.addf %102, %103 : vector<8x8xf32>
    %105 = math.tanh %104 : vector<8x8xf32>
    %106 = arith.mulf %101, %105 : vector<8x8xf32>
    %107 = vector.shape_cast %62 : vector<8x8xf32> to vector<1x8x8xf32>
    %108 = vector.shape_cast %106 : vector<8x8xf32> to vector<1x8x8xf32>
    %109 = tpu.concatenate %107, %108 in 0 : vector<1x8x8xf32>, vector<1x8x8xf32> -> vector<2x8x8xf32>
    %c0_39 = arith.constant 0 : index
    %c0_40 = arith.constant 0 : index
    %c0_41 = arith.constant 0 : index
    %110 = vector.load %arg4[%c0_39, %c0_40, %c0_41] : memref<2x8x8xf32, #tpu.memory_space<vmem>>, vector<2x8x8xf32>
    tpu.vector_store %arg4[%c0_39, %c0_40, %c0_41], %109 {strides = array<i32>} : memref<2x8x8xf32, #tpu.memory_space<vmem>>, vector<2x8x8xf32>,
    return
  }
}

</mosaic_0001>

<bundles_post_ra>
// kernel: lstm_stock_forward.1
= control target key start
LH: loop header
LB: loop body
LE: loop exit
PB: predicated region body
PF: predicated region fallthrough
CT: control target
= control target key end

     0   :  { %vm85_vm0 = vcmask 64512   ;;  %v1204_v0 = vmov 0.0   ;;  %v1205_v4 = vmov 0   ;;  %s1446_s2 = inlined_call_operand.vmem [shape: f32[2,32,8], index: 2, kind: input, shape index: {}]   ;;  %s1447_s0 = inlined_call_operand.vmem [shape: f32[1,8,8], index: 0, kind: input, shape index: {}]   ;;  %s1448_s1 = inlined_call_operand.vmem [shape: f32[2,32,8], index: 1, kind: input, shape index: {}]   ;;  %s1449_s3 = inlined_call_operand.vmem [shape: f32[2,32,1], index: 3, kind: input, shape index: {}]   ;;  %s1450_s4 = inlined_call_operand.vmem [shape: f32[2,8,8], index: 4, kind: output, shape index: {}]  }
   0x1   :  { %1064 = vmatprep.subr.mxu0 %v1204_v0  ;;  %v26_v1 = vld [vmem:[%s1446_s2] sm:$0xff]  ;;  %v1240_v3 = vld [vmem:[%s1446_s2 + $0x8] sm:$0xff]  ;;  %1130 = vset.pattern.permute.xlu0 %v1205_v4  ;;  %v1256_v7 = vld [vmem:[%s1446_s2 + $0x10] sm:$0xff] }
   0x2   :  { %v84_v2 = vld [vmem:[%s1447_s0] sm:$0xff]  ;;  %1065 = vmatpush3.msra.mxu0 %v1204_v0  ;;  %1066 = vmatprep.mubr.msk.f32.mxu0 %vm85_vm0, %v26_v1  ;;  %v1251_v6 = vld [vmem:[%s1448_s1 + $0x8] sm:$0xff]  ;;  %v1263_v8 = vld [vmem:[%s1448_s1 + $0x10] sm:$0xff] }
   0x3   :  { %v1246_v5 = vld [vmem:[%s1448_s1] sm:$0xff]  ;;  %1072 = vmatprep.subr.mxu1 %v84_v2  ;;  %1067 = vmatmul.mubr.msk.f32.vlgmr.msra.gmra.mxu0 %vm85_vm0, %v1240_v3  ;;  %v1270_v9 = vld [vmem:[%s1446_s2 + $0x18] sm:$0xff]  ;;  %v37_v10 = vld [vmem:[%s1449_s3 + $0x10] sm:$0xff] }
   0x4   :  { %1073 = vmatpush3.msra.mxu1 %v84_v2  ;;  %1074 = vmatprep.mubr.msk.f32.mxu1 %vm85_vm0, %v1246_v5  ;;  %v36_v11 = vld [vmem:[%s1449_s3 + $0x8] sm:$0xff]  ;;  %v1287_v12 = vld [vmem:[%s1448_s1 + $0x18] sm:$0xff]  ;;  %v35_v13 = vld [vmem:[%s1449_s3] sm:$0xff] }
   0x5   :  { %1075 = vmatmul.mubr.msk.f32.vlgmr.msra.gmra.mxu1 %vm85_vm0, %v1251_v6  ;;  %1069 = vmatprep.mubr.msk.f32.mxu0 %vm85_vm0, %v1256_v7  ;;  %v38_v14 = vld [vmem:[%s1449_s3 + $0x18] sm:$0xff]  ;;  %v970_v15 = vld [vmem:[%s1449_s3 + $0x30] sm:$0xff]  ;;  %v968_v16 = vld [vmem:[%s1449_s3 + $0x20] sm:$0xff] }
   0x6   :  { %1077 = vmatprep.mubr.msk.f32.mxu1 %vm85_vm0, %v1263_v8  ;;  %51 = vperm.xlu0 %1130, %v37_v10   ;;  %v969_v17 = vld [vmem:[%s1449_s3 + $0x28] sm:$0xff]  ;;  %v971_v18 = vld [vmem:[%s1449_s3 + $0x38] sm:$0xff]  ;;  %v1314_v19 = vld [vmem:[%s1446_s2 + $0x20] sm:$0xff] }
   0x7   :  { %1070 = vmatmul.mubr.msk.f32.gmra.mxu0 %vm85_vm0, %v1270_v9  ;;  %1131 = vset.pattern.permute.xlu1 %v1205_v4  ;;  %v1319_v20 = vld [vmem:[%s1446_s2 + $0x28] sm:$0xff]  ;;  %v1328_v21 = vld [vmem:[%s1448_s1 + $0x20] sm:$0xff]  ;;  %v1335_v22 = vld [vmem:[%s1446_s2 + $0x30] sm:$0xff] }
   0x8   :  { %46 = vperm.xlu1 %1131, %v36_v11   ;;  %1080 = vmatprep.subr.mxu0 %v1204_v0  ;;  %v1340_v23 = vld [vmem:[%s1446_s2 + $0x38] sm:$0xff]  ;;  %v1365_v4 = vld [vmem:[%s1448_s1 + $0x28] sm:$0xff]  ;;  %v1370_v10 = vld [vmem:[%s1448_s1 + $0x30] sm:$0xff] }
   0x9   :  { %1078 = vmatmul.mubr.msk.f32.gmra.mxu1 %vm85_vm0, %v1287_v12  ;;  %1081 = vmatpush3.msra.mxu0 %v1204_v0  ;;  %v1381_v11 = vld [vmem:[%s1448_s1 + $0x38] sm:$0xff] }
   0xa   :  { %41 = vperm.xlu0 %1130, %v35_v13   ;;  %1082 = vmatprep.mubr.msk.f32.mxu0 %vm85_vm0, %v1314_v19 }
   0xb   :  { %1083 = vmatmul.mubr.msk.f32.vlgmr.msra.gmra.mxu0 %vm85_vm0, %v1319_v20  ;;  %1090 = vmatprep.mubr.msk.f32.mxu1 %vm85_vm0, %v1328_v21 }
   0xc   :  { %56 = vperm.xlu1 %1131, %v38_v14   ;;  %1085 = vmatprep.mubr.msk.f32.mxu0 %vm85_vm0, %v1335_v22 }
   0xe   :  { %76 = vperm.xlu0 %1130, %v970_v15  }
   0xf   :  { %1086 = vmatmul.mubr.msk.f32.gmra.mxu0 %vm85_vm0, %v1340_v23 }
  0x10   :  { %66 = vperm.xlu1 %1131, %v968_v16   ;;  %1098 = vmatprep.mubr.msk.f32.mxu0 %vm85_vm0, %v26_v1 }
  0x12   :  { %71 = vperm.xlu0 %1130, %v969_v17  }
  0x14   :  { %81 = vperm.xlu1 %1131, %v971_v18  }
  0x81   :  { %v1347_v24 = vpop.permute.xlu0 %51 }
  0x83   :  { %v1349_v28 = vpop.permute.xlu1 %46 }
  0x85   :  { %v1351_v32 = vpop.permute.xlu0 %41 }
  0x87   :  { %v1356_v45 = vpop.permute.xlu1 %56 }
  0x89   :  { %v1393_v13 = vpop.permute.xlu0 %76 }
  0x8d   :  { %v1395_v16 = vpop.permute.xlu0 %71 }
  0xc3   :  { %v1068_v25 = vpop.f32.mrf.mxu0 }
  0xc5   :  { %v1076_v26 = vpop.f32.mrf.mxu1  ;;  %v164_v27 = vpop.f32.mrf.mxu0 }
  0xc6   :  { %v267_v29 = vadd.f32 %v1076_v26, %v1068_v25 }
  0xc7   :  { %v261_v30 = vpop.f32.mrf.mxu1  ;;  %v1071_v31 = vpop.f32.mrf.mxu0 }
  0xc8   :  { %v281_v33 = vadd.f32 %v267_v29, %v1349_v28  ;;  %v262_v34 = vadd.f32 %v261_v30, %v164_v27 }
  0xc9   :  { %v1079_v35 = vpop.f32.mrf.mxu1  ;;  %v174_v36 = vpop.f32.mrf.mxu0 }
  0xca   :  { %v280_v37 = vadd.f32 %v262_v34, %v1351_v32  ;;  %v981_v39 = vmul.f32 -1.442695, %v281_v33  ;;  %v277_v44 = vadd.f32 %v1079_v35, %v1071_v31 }
  0xcb   :  { %v271_v38 = vpop.f32.mrf.mxu1 }
  0xcc   :  { %v272_v40 = vadd.f32 %v271_v38, %v174_v36  ;;  %v980_v41 = vmul.f32 -1.442695, %v280_v37  ;;  %1132 = vpow2.f32 %v981_v39  ;;  %v283_v46 = vadd.f32 %v277_v44, %v1356_v45 }
  0xce   :  { %v282_v42 = vadd.f32 %v272_v40, %v1347_v24  ;;  %1134 = vpow2.f32 %v980_v41  ;;  %v983_v50 = vmul.f32 -1.442695, %v283_v46 }
  0xd0   :  { %v982_v43 = vmul.f32 -1.442695, %v282_v42 }
  0xd2   :  { %1136 = vpow2.f32 %v982_v43 }
  0xd9   :  { %v1133_v47 = vpop.eup %1132 }
  0xda   :  { %v297_v51 = vadd.f32 1.0, %v1133_v47 }
  0xdb   :  { %v1135_v48 = vpop.eup %1134 }
  0xdc   :  { %v296_v53 = vadd.f32 1.0, %v1135_v48 }
  0xdf   :  { %v1137_v49 = vpop.eup %1136 }
  0xe0   :  { %v298_v52 = vadd.f32 1.0, %v1137_v49 }
  0xe2   :  { %1138 = vrcp.f32 %v298_v52 }
  0xe3   :  { %1140 = vpow2.f32 %v983_v50 }
  0xe4   :  { %1142 = vrcp.f32 %v297_v51 }
  0xe5   :  { %1144 = vrcp.f32 %v296_v53 }
  0xef   :  { %v1139_v54 = vpop.eup %1138 }
  0xf0   :  { %v1141_v55 = vpop.eup %1140  ;;  %v308_v56 = vmul.f32 2.0, %v1139_v54 }
  0xf1   :  { %v1143_v57 = vpop.eup %1142  ;;  %v299_v60 = vadd.f32 1.0, %v1141_v55 }
  0xf2   :  { %v984_v58 = vadd.f32 -1.0, %v308_v56  ;;  %v1145_v59 = vpop.eup %1144  ;;  %v310_v61 = vmul.f32 0.0, %v1143_v57 }
  0xf3   :  { %1146 = vrcp.f32 %v299_v60 }
  0xf4   :  { %v311_v62 = vmul.f32 %v1145_v59, %v984_v58 }
  0xf6   :  { %v1359_v63 = vadd.f32 %v311_v62, %v310_v61 }
  0xf8   :  { %1148 = vtanh.f32 %v1359_v63 }
 0x100   :  { %v1147_v0 = vpop.eup %1146 }
 0x105   :  { %v1149_v1 = vpop.eup %1148 }
 0x106   :  { %v314_v2 = vmul.f32 %v1149_v1, %v1147_v0 }
 0x108   :  { %1088 = vmatprep.subr.mxu1 %v314_v2  ;;  %1096 = vmatprep.subr.mxu0 %v314_v2 }
 0x109   :  { %1089 = vmatpush3.msra.mxu1 %v314_v2  ;;  %1097 = vmatpush3.msra.mxu0 %v314_v2 }
 0x10a   :  { %1091 = vmatmul.mubr.msk.f32.vlgmr.msra.gmra.mxu1 %vm85_vm0, %v1365_v4  ;;  %1099 = vmatmul.mubr.msk.f32.vlgmr.msra.gmra.mxu0 %vm85_vm0, %v1240_v3  ;;  %v1084_v3 = vpop.f32.mrf.mxu0 }
 0x10b   :  { %1093 = vmatprep.mubr.msk.f32.mxu1 %vm85_vm0, %v1370_v10  ;;  %1101 = vmatprep.mubr.msk.f32.mxu0 %vm85_vm0, %v1256_v7 }
 0x10c   :  { %v393_v14 = vpop.f32.mrf.mxu0 }
 0x10e   :  { %1094 = vmatmul.mubr.msk.f32.gmra.mxu1 %vm85_vm0, %v1381_v11  ;;  %1102 = vmatmul.mubr.msk.f32.gmra.mxu0 %vm85_vm0, %v1270_v9  ;;  %v1087_v17 = vpop.f32.mrf.mxu0  ;;  %v1398_v9 = vpop.permute.xlu1 %66 }
 0x10f   :  { %1106 = vmatprep.mubr.msk.f32.mxu1 %vm85_vm0, %v1246_v5  ;;  %1114 = vmatprep.mubr.msk.f32.mxu0 %vm85_vm0, %v1314_v19 }
 0x110   :  { %v403_v29 = vpop.f32.mrf.mxu0 }
 0x112   :  { %v1402_v37 = vpop.permute.xlu1 %81 }
 0x1ca   :  { %v1092_v15 = vpop.f32.mrf.mxu1  ;;  %v1100_v60 = vpop.f32.mrf.mxu0 }
 0x1cb   :  { %v496_v7 = vadd.f32 %v1092_v15, %v1084_v3 }
 0x1cc   :  { %v490_v18 = vpop.f32.mrf.mxu1 }
 0x1cd   :  { %v510_v25 = vadd.f32 %v496_v7, %v1395_v16  ;;  %v491_v26 = vadd.f32 %v490_v18, %v393_v14 }
 0x1ce   :  { %v1095_v27 = vpop.f32.mrf.mxu1 }
 0x1cf   :  { %v509_v5 = vadd.f32 %v491_v26, %v1398_v9  ;;  %v994_v30 = vmul.f32 -1.442695, %v510_v25  ;;  %v506_v36 = vadd.f32 %v1095_v27, %v1087_v17 }
 0x1d0   :  { %v500_v19 = vpop.f32.mrf.mxu1 }
 0x1d1   :  { %v501_v31 = vadd.f32 %v500_v19, %v403_v29  ;;  %v993_v33 = vmul.f32 -1.442695, %v509_v5  ;;  %1150 = vpow2.f32 %v994_v30  ;;  %v512_v38 = vadd.f32 %v506_v36, %v1402_v37 }
 0x1d3   :  { %v511_v34 = vadd.f32 %v501_v31, %v1393_v13  ;;  %1152 = vpow2.f32 %v993_v33  ;;  %v996_v42 = vmul.f32 -1.442695, %v512_v38 }
 0x1d5   :  { %v995_v35 = vmul.f32 -1.442695, %v511_v34 }
 0x1d7   :  { %1154 = vpow2.f32 %v995_v35 }
 0x1de   :  { %v1151_v39 = vpop.eup %1150 }
 0x1df   :  { %v526_v43 = vadd.f32 1.0, %v1151_v39 }
 0x1e0   :  { %v1153_v40 = vpop.eup %1152 }
 0x1e1   :  { %v525_v46 = vadd.f32 1.0, %v1153_v40 }
 0x1e4   :  { %v1155_v41 = vpop.eup %1154 }
 0x1e5   :  { %v527_v44 = vadd.f32 1.0, %v1155_v41 }
 0x1e7   :  { %1156 = vrcp.f32 %v527_v44 }
 0x1e8   :  { %1158 = vpow2.f32 %v996_v42 }
 0x1e9   :  { %1160 = vrcp.f32 %v526_v43 }
 0x1ea   :  { %1162 = vrcp.f32 %v525_v46 }
 0x1f4   :  { %v1157_v47 = vpop.eup %1156 }
 0x1f5   :  { %v1159_v48 = vpop.eup %1158  ;;  %v537_v49 = vmul.f32 2.0, %v1157_v47 }
 0x1f6   :  { %v1161_v50 = vpop.eup %1160  ;;  %v528_v53 = vadd.f32 1.0, %v1159_v48 }
 0x1f7   :  { %v997_v51 = vadd.f32 -1.0, %v537_v49  ;;  %v1163_v52 = vpop.eup %1162  ;;  %v539_v54 = vmul.f32 0.0, %v1161_v50 }
 0x1f8   :  { %1164 = vrcp.f32 %v528_v53 }
 0x1f9   :  { %v540_v55 = vmul.f32 %v1163_v52, %v997_v51 }
 0x1fb   :  { %v1405_v56 = vadd.f32 %v540_v55, %v539_v54 }
 0x1fd   :  { %1166 = vtanh.f32 %v1405_v56 }
 0x205   :  { %v1165_v57 = vpop.eup %1164 }
 0x20a   :  { %v1167_v58 = vpop.eup %1166 }
 0x20b   :  { %v543_v59 = vmul.f32 %v1167_v58, %v1165_v57 }
 0x20d   :  { %1104 = vmatprep.subr.mxu1 %v543_v59  ;;  %954 = vst.msk [vmem:[%s1450_s4] sm:$0xff] %vm85_vm0, %v543_v59  ;;  %1112 = vmatprep.subr.mxu0 %v543_v59 }
 0x20e   :  { %1105 = vmatpush3.msra.mxu1 %v543_v59  ;;  %1113 = vmatpush3.msra.mxu0 %v543_v59 }
 0x20f   :  { %1107 = vmatmul.mubr.msk.f32.vlgmr.msra.gmra.mxu1 %vm85_vm0, %v1251_v6  ;;  %1115 = vmatmul.mubr.msk.f32.vlgmr.msra.gmra.mxu0 %vm85_vm0, %v1319_v20  ;;  %v610_v6 = vpop.f32.mrf.mxu0 }
 0x210   :  { %1109 = vmatprep.mubr.msk.f32.mxu1 %vm85_vm0, %v1263_v8  ;;  %1117 = vmatprep.mubr.msk.f32.mxu0 %vm85_vm0, %v1335_v22 }
 0x211   :  { %v1103_v20 = vpop.f32.mrf.mxu0 }
 0x213   :  { %1110 = vmatmul.mubr.msk.f32.gmra.mxu1 %vm85_vm0, %v1287_v12  ;;  %1118 = vmatmul.mubr.msk.f32.gmra.mxu0 %vm85_vm0, %v1340_v23  ;;  %v620_v3 = vpop.f32.mrf.mxu0 }
 0x214   :  { %1122 = vmatprep.mubr.msk.f32.mxu1 %vm85_vm0, %v1328_v21 }
 0x2cf   :  { %v1108_v61 = vpop.f32.mrf.mxu1  ;;  %v1116_v42 = vpop.f32.mrf.mxu0 }
 0x2d0   :  { %v701_v62 = vadd.f32 %v1108_v61, %v1100_v60 }
 0x2d1   :  { %v695_v0 = vpop.f32.mrf.mxu1 }
 0x2d2   :  { %v715_v8 = vadd.f32 %v701_v62, %v1349_v28  ;;  %v696_v1 = vadd.f32 %v695_v0, %v610_v6 }
 0x2d3   :  { %v1111_v2 = vpop.f32.mrf.mxu1 }
 0x2d4   :  { %v714_v22 = vadd.f32 %v696_v1, %v1351_v32  ;;  %v1007_v14 = vmul.f32 -1.442695, %v715_v8  ;;  %v711_v17 = vadd.f32 %v1111_v2, %v1103_v20 }
 0x2d5   :  { %v705_v12 = vpop.f32.mrf.mxu1 }
 0x2d6   :  { %v706_v15 = vadd.f32 %v705_v12, %v620_v3  ;;  %v1006_v23 = vmul.f32 -1.442695, %v714_v22  ;;  %1168 = vpow2.f32 %v1007_v14  ;;  %v717_v18 = vadd.f32 %v711_v17, %v1356_v45 }
 0x2d8   :  { %v716_v7 = vadd.f32 %v706_v15, %v1347_v24  ;;  %1170 = vpow2.f32 %v1006_v23  ;;  %v1009_v27 = vmul.f32 -1.442695, %v717_v18 }
 0x2da   :  { %v1008_v21 = vmul.f32 -1.442695, %v716_v7 }
 0x2dc   :  { %1172 = vpow2.f32 %v1008_v21 }
 0x2e3   :  { %v1169_v25 = vpop.eup %1168 }
 0x2e4   :  { %v731_v5 = vadd.f32 1.0, %v1169_v25 }
 0x2e5   :  { %v1171_v28 = vpop.eup %1170 }
 0x2e6   :  { %v730_v29 = vadd.f32 1.0, %v1171_v28 }
 0x2e9   :  { %v1173_v26 = vpop.eup %1172 }
 0x2ea   :  { %v732_v32 = vadd.f32 1.0, %v1173_v26 }
 0x2ec   :  { %1174 = vrcp.f32 %v732_v32 }
 0x2ed   :  { %1176 = vpow2.f32 %v1009_v27 }
 0x2ee   :  { %1178 = vrcp.f32 %v731_v5 }
 0x2ef   :  { %1180 = vrcp.f32 %v730_v29 }
 0x2f9   :  { %v1175_v19 = vpop.eup %1174 }
 0x2fa   :  { %v1177_v24 = vpop.eup %1176  ;;  %v742_v30 = vmul.f32 2.0, %v1175_v19 }
 0x2fb   :  { %v1179_v31 = vpop.eup %1178  ;;  %v733_v35 = vadd.f32 1.0, %v1177_v24 }
 0x2fc   :  { %v1010_v33 = vadd.f32 -1.0, %v742_v30  ;;  %v1181_v34 = vpop.eup %1180  ;;  %v744_v45 = vmul.f32 %v1179_v31, %v1359_v63  ;;  %v815_v63 = vpop.f32.mrf.mxu0 }
 0x2fd   :  { %1182 = vrcp.f32 %v733_v35 }
 0x2fe   :  { %v745_v36 = vmul.f32 %v1181_v34, %v1010_v33  ;;  %v1119_v47 = vpop.f32.mrf.mxu0 }
 0x300   :  { %v746_v38 = vadd.f32 %v745_v36, %v744_v45  ;;  %v825_v52 = vpop.f32.mrf.mxu0 }
 0x302   :  { %1184 = vtanh.f32 %v746_v38 }
 0x30a   :  { %v1183_v39 = vpop.eup %1182 }
 0x30f   :  { %v1185_v40 = vpop.eup %1184 }
 0x310   :  { %v748_v41 = vmul.f32 %v1185_v40, %v1183_v39 }
 0x312   :  { %1120 = vmatprep.subr.mxu1 %v748_v41 }
 0x313   :  { %1121 = vmatpush3.msra.mxu1 %v748_v41 }
 0x314   :  { %1123 = vmatmul.mubr.msk.f32.vlgmr.msra.gmra.mxu1 %vm85_vm0, %v1365_v4 }
 0x315   :  { %1125 = vmatprep.mubr.msk.f32.mxu1 %vm85_vm0, %v1370_v10 }
 0x318   :  { %1126 = vmatmul.mubr.msk.f32.gmra.mxu1 %vm85_vm0, %v1381_v11 }
 0x3d4   :  { %v1124_v43 = vpop.f32.mrf.mxu1 }
 0x3d5   :  { %v906_v44 = vadd.f32 %v1124_v43, %v1116_v42 }
 0x3d6   :  { %v900_v46 = vpop.f32.mrf.mxu1 }
 0x3d7   :  { %v920_v48 = vadd.f32 %v906_v44, %v1395_v16  ;;  %v901_v49 = vadd.f32 %v900_v46, %v815_v63 }
 0x3d8   :  { %v1127_v50 = vpop.f32.mrf.mxu1 }
 0x3d9   :  { %v919_v51 = vadd.f32 %v901_v49, %v1398_v9  ;;  %v1020_v53 = vmul.f32 -1.442695, %v920_v48  ;;  %v916_v57 = vadd.f32 %v1127_v50, %v1119_v47 }
 0x3da   :  { %v910_v4 = vpop.f32.mrf.mxu1 }
 0x3db   :  { %v911_v54 = vadd.f32 %v910_v4, %v825_v52  ;;  %v1019_v10 = vmul.f32 -1.442695, %v919_v51  ;;  %1186 = vpow2.f32 %v1020_v53  ;;  %v922_v58 = vadd.f32 %v916_v57, %v1402_v37 }
 0x3dd   :  { %v921_v55 = vadd.f32 %v911_v54, %v1393_v13  ;;  %1188 = vpow2.f32 %v1019_v10  ;;  %v1022_v6 = vmul.f32 -1.442695, %v922_v58 }
 0x3df   :  { %v1021_v11 = vmul.f32 -1.442695, %v921_v55 }
 0x3e1   :  { %1190 = vpow2.f32 %v1021_v11 }
 0x3e8   :  { %v1187_v59 = vpop.eup %1186 }
 0x3e9   :  { %v936_v61 = vadd.f32 1.0, %v1187_v59 }
 0x3ea   :  { %v1189_v16 = vpop.eup %1188 }
 0x3eb   :  { %v935_v62 = vadd.f32 1.0, %v1189_v16 }
 0x3ee   :  { %v1191_v60 = vpop.eup %1190 }
 0x3ef   :  { %v937_v9 = vadd.f32 1.0, %v1191_v60 }
 0x3f1   :  { %1192 = vrcp.f32 %v937_v9 }
 0x3f2   :  { %1194 = vpow2.f32 %v1022_v6 }
 0x3f3   :  { %1196 = vrcp.f32 %v936_v61 }
 0x3f4   :  { %1198 = vrcp.f32 %v935_v62 }
 0x3fe   :  { %v1193_v20 = vpop.eup %1192 }
 0x3ff   :  { %v1195_v13 = vpop.eup %1194  ;;  %v947_v0 = vmul.f32 2.0, %v1193_v20 }
 0x400   :  { %v1197_v8 = vpop.eup %1196  ;;  %v938_v22 = vadd.f32 1.0, %v1195_v13 }
 0x401   :  { %v1023_v1 = vadd.f32 -1.0, %v947_v0  ;;  %v1199_v2 = vpop.eup %1198  ;;  %v949_v37 = vmul.f32 %v1197_v8, %v1405_v56 }
 0x402   :  { %1200 = vrcp.f32 %v938_v22 }
 0x403   :  { %v950_v3 = vmul.f32 %v1199_v2, %v1023_v1 }
 0x405   :  { %v951_v12 = vadd.f32 %v950_v3, %v949_v37 }
 0x407   :  { %1202 = vtanh.f32 %v951_v12 }
 0x40f   :  { %v1201_v14 = vpop.eup %1200 }
 0x414   :  { %v1203_v15 = vpop.eup %1202 }
 0x415   :  { %v953_v23 = vmul.f32 %v1203_v15, %v1201_v14 }
 0x417   :  { %955 = vst.msk [vmem:[%s1450_s4 + $0x8] sm:$0xff] %vm85_vm0, %v953_v23 }

</bundles_post_ra>
